<compile_context>
chip_gen: v5e
topology: v5e:2x2
jax: 0.10.0
libtpu: 0.0.40
codegen_flags: <defaults>
</compile_context>

<pallas_src>
import functools

import jax
import jax.numpy as jnp
from jax.experimental import pallas as pl
from jax.experimental.pallas import tpu as pltpu


# ---------------------------------------------------------------------------
# Generation-aware scoped-VMEM limit (~3/4 of physical VMEM:
# v5e/v6e 128 MiB -> 96 MiB, v7x 64 MiB -> 48 MiB).  Safe fallback 48 MiB.
# ---------------------------------------------------------------------------
@functools.lru_cache(maxsize=None)
def _vmem_limit_bytes() -> int:
    try:
        info = pltpu.get_tpu_info()
        cap = getattr(info, "vmem_capacity_bytes", None)
        if cap:
            return int(min(int(cap) * 3 // 4, 96 * 1024 * 1024))
    except Exception:
        pass
    return 48 * 1024 * 1024


def _compiler_params(dimension_semantics):
    return pltpu.CompilerParams(dimension_semantics=dimension_semantics,
                                vmem_limit_bytes=_vmem_limit_bytes())


def _pick_col_tile(total: int, desired: int, align: int = 128) -> int:
    """Largest multiple of `align` that divides `total` and is <= desired."""
    if total % align != 0:
        return total
    best = align
    t = align
    upper = min(desired, total)
    while t <= upper:
        if total % t == 0:
            best = t
        t += align
    return best


# ---------------------------------------------------------------------------
# Kernel 1: (emb [+type] [*mask]) -> Linear E->P -> SiLU -> LayerNorm
# Row-tiled over N = B*S ("parallel").
# ---------------------------------------------------------------------------
def _embed_proj_kernel(*refs, has_type, has_mask, eps):
    it = iter(refs)
    emb_ref = next(it)
    type_ref = next(it) if has_type else None
    mask_ref = next(it) if has_mask else None
    w_ref, b_ref, g_ref, beta_ref, o_ref = (next(it), next(it), next(it),
                                            next(it), next(it))

    x = emb_ref[...]
    if has_type:
        x = x + type_ref[...]
    if has_mask:
        x = x * mask_ref[...]
    # bf16 matmul on the MXU, f32 accumulation.
    h = jnp.dot(x.astype(jnp.bfloat16), w_ref[...],
                preferred_element_type=jnp.float32) + b_ref[...]
    h = h * jax.nn.sigmoid(h)                               # SiLU (f32)
    mu = jnp.mean(h, axis=-1, keepdims=True)                # LN stats in f32
    var = jnp.mean(jnp.square(h - mu), axis=-1, keepdims=True)
    hn = (h - mu) * jax.lax.rsqrt(var + eps)
    o_ref[...] = (hn * g_ref[...] + beta_ref[...]).astype(o_ref.dtype)


def embed_proj_silu_ln(emb2d, type2d, mask2d, w, b, gamma, beta, *,
                       row_block=512):
    n, e = emb2d.shape
    p = w.shape[1]
    tn = min(row_block, n)
    has_type = type2d is not None
    has_mask = mask2d is not None

    row_spec = pl.BlockSpec((tn, e), lambda i: (i, 0))
    in_specs = [row_spec]
    args = [emb2d]
    if has_type:
        in_specs.append(row_spec)
        args.append(type2d)
    if has_mask:
        in_specs.append(pl.BlockSpec((tn, 1), lambda i: (i, 0)))
        args.append(mask2d)
    in_specs += [
        pl.BlockSpec((e, p), lambda i: (0, 0)),
        pl.BlockSpec((1, p), lambda i: (0, 0)),
        pl.BlockSpec((1, p), lambda i: (0, 0)),
        pl.BlockSpec((1, p), lambda i: (0, 0)),
    ]
    args += [w, b, gamma, beta]

    kernel = functools.partial(_embed_proj_kernel, has_type=has_type,
                               has_mask=has_mask, eps=1e-5)
    return pl.pallas_call(
        kernel,
        out_shape=jax.ShapeDtypeStruct((n, p), jnp.bfloat16),
        grid=(pl.cdiv(n, tn),),
        in_specs=in_specs,
        out_specs=pl.BlockSpec((tn, p), lambda i: (i, 0)),
        compiler_params=_compiler_params(("parallel",)),
    )(*args)


# ---------------------------------------------------------------------------
# Kernel 2: fused causal conv mixer — ALL layers in one pallas_call.
# grid = (B/TB, n_layers); activation resident in VMEM scratch across layers.
# NOTE: the layer axis MUST be the last ("arbitrary") grid axis — the f32
# activation scratch carries state across it and is re-initialized at layer 0.
# ---------------------------------------------------------------------------
def _mixer_kernel(x_ref, w_ref, b_ref, *out_and_scratch,
                  K, S, P, TB, n_layers, emit_aux):
    if emit_aux:
        o_ref, aux_ref, xbuf_ref = out_and_scratch
    else:
        o_ref, xbuf_ref = out_and_scratch
    layer = pl.program_id(1)

    @pl.when(layer == 0)
    def _():
        xbuf_ref[...] = x_ref[...].astype(jnp.float32)

    x_cur = xbuf_ref[...]                                      # (TB, S, P) f32
    lhs = x_cur.reshape(TB * S, P).astype(jnp.bfloat16)
    # One MXU matmul for all K taps: (TB*S, P) @ (P, K*P).
    z = jnp.dot(lhs, w_ref[0], preferred_element_type=jnp.float32)

    # Causal shift of each tap's OUTPUT: XLU roll (jnp.roll semantics) + VPU
    # mask of the first k rows of every sequence.  No misaligned slices, no
    # (S, K*P) operand relayout; the mask also kills cross-batch-row bleed.
    seq_pos = jax.lax.broadcasted_iota(jnp.int32, (TB, S, 1), 1).reshape(TB * S, 1)
    h = z[:, :P]
    for k in range(1, K):
        yk = pltpu.roll(z[:, k * P:(k + 1) * P], k, 0)
        h = h + jnp.where(seq_pos >= k, yk, 0.0)
    h = h + b_ref[0]
    h = h * jax.nn.sigmoid(h)                                  # SiLU
    new_x = h.reshape(TB, S, P) + x_cur                        # residual (f32)
    xbuf_ref[...] = new_x                                      # VMEM-resident

    if emit_aux:
        aux_ref[0] = new_x.astype(aux_ref.dtype)

    @pl.when(layer == n_layers - 1)
    def _():
        o_ref[...] = new_x.astype(o_ref.dtype)


def causal_conv_mixer(x, conv_w, conv_b, *, window_size, n_layers,
                      batch_block=None, emit_aux=False):
    bsz, s, p = x.shape
    k = window_size
    if batch_block is None:
        # Keep >= 2 batch tiles when possible so both v7x TCs get work while
        # still amortizing the per-layer weight DMA over TB rows.
        batch_block = max(1, bsz // 2) if bsz >= 2 else 1
    tb = min(batch_block, bsz)
    while bsz % tb != 0:          # exact division -> no ragged batch tile
        tb -= 1

    kernel = functools.partial(_mixer_kernel, K=k, S=s, P=p, TB=tb,
                               n_layers=n_layers, emit_aux=emit_aux)
    in_specs = [
        pl.BlockSpec((tb, s, p), lambda b, l: (b, 0, 0)),        # activation
        pl.BlockSpec((1, p, k * p), lambda b, l: (l, 0, 0)),     # layer weight
        pl.BlockSpec((1, 1, p), lambda b, l: (l, 0, 0)),         # layer bias
    ]
    if emit_aux:
        out_shape = (jax.ShapeDtypeStruct((bsz, s, p), jnp.bfloat16),
                     jax.ShapeDtypeStruct((n_layers, bsz, s, p), jnp.bfloat16))
        out_specs = (pl.BlockSpec((tb, s, p), lambda b, l: (b, 0, 0)),
                     pl.BlockSpec((1, tb, s, p), lambda b, l: (l, b, 0, 0)))
    else:
        out_shape = jax.ShapeDtypeStruct((bsz, s, p), jnp.bfloat16)
        out_specs = pl.BlockSpec((tb, s, p), lambda b, l: (b, 0, 0))

    return pl.pallas_call(
        kernel,
        out_shape=out_shape,
        grid=(bsz // tb, n_layers),
        in_specs=in_specs,
        out_specs=out_specs,
        scratch_shapes=[pltpu.VMEM((tb, s, p), jnp.float32)],
        compiler_params=_compiler_params(("parallel", "arbitrary")),
    )(x, conv_w, conv_b)


# ---------------------------------------------------------------------------
# Kernel 3: LM head (Linear P->C, no bias) + log_softmax, two-pass C-tiled LSE.
# ---------------------------------------------------------------------------
def _head_lse_kernel(x_ref, w_ref, lse_ref, m_sc, l_sc, *, tc, c_total,
                     masked_tail):
    j = pl.program_id(1)

    @pl.when(j == 0)
    def _():
        m_sc[...] = jnp.full(m_sc.shape, -jnp.inf, m_sc.dtype)
        l_sc[...] = jnp.zeros(l_sc.shape, l_sc.dtype)

    z = jnp.dot(x_ref[...], w_ref[...], preferred_element_type=jnp.float32)
    if masked_tail:
        col = j * tc + jax.lax.broadcasted_iota(jnp.int32, z.shape, 1)
        z = jnp.where(col < c_total, z, -jnp.inf)

    m_prev = m_sc[...]
    m_new = jnp.maximum(m_prev, jnp.max(z, axis=-1, keepdims=True))
    l_sc[...] = (l_sc[...] * jnp.exp(m_prev - m_new)
                 + jnp.sum(jnp.exp(z - m_new), axis=-1, keepdims=True))
    m_sc[...] = m_new

    @pl.when(j == pl.num_programs(1) - 1)
    def _():
        lse_ref[...] = m_sc[...] + jnp.log(l_sc[...])


def _head_norm_kernel(x_ref, w_ref, lse_ref, o_ref):
    z = jnp.dot(x_ref[...], w_ref[...], preferred_element_type=jnp.float32)
    o_ref[...] = (z - lse_ref[...]).astype(o_ref.dtype)


def _head_raw_kernel(x_ref, w_ref, o_ref):
    o_ref[...] = jnp.dot(x_ref[...], w_ref[...],
                         preferred_element_type=jnp.float32).astype(o_ref.dtype)


def _pad_classes(w):
    c = w.shape[1]
    c_pad = ((c + 127) // 128) * 128
    if c_pad != c:
        w = jnp.pad(w, ((0, 0), (0, c_pad - c)))
    return w, c, c_pad


def head_logsoftmax(x2d, w, *, row_block=512, col_block=512):
    """log_softmax(x @ w): pass 1 -> per-row logsumexp, pass 2 -> normalized
    lane-dense (tn, tc) output tiles.  No C-resident block, no RMW epilogue."""
    n, p = x2d.shape
    w, c, c_pad = _pad_classes(w)
    tc = _pick_col_tile(c_pad, col_block)
    tn = min(row_block, n)
    rows, cols = pl.cdiv(n, tn), c_pad // tc

    lse_kernel = functools.partial(_head_lse_kernel, tc=tc, c_total=c,
                                   masked_tail=(c_pad != c))
    lse = pl.pallas_call(
        lse_kernel,
        out_shape=jax.ShapeDtypeStruct((n, 1), jnp.float32),
        grid=(rows, cols),
        in_specs=[pl.BlockSpec((tn, p), lambda i, j: (i, 0)),
                  pl.BlockSpec((p, tc), lambda i, j: (0, j))],
        out_specs=pl.BlockSpec((tn, 1), lambda i, j: (i, 0)),
        scratch_shapes=[pltpu.VMEM((tn, 1), jnp.float32),
                        pltpu.VMEM((tn, 1), jnp.float32)],
        compiler_params=_compiler_params(("parallel", "arbitrary")),
    )(x2d, w)

    out = pl.pallas_call(
        _head_norm_kernel,
        out_shape=jax.ShapeDtypeStruct((n, c_pad), jnp.float32),
        grid=(rows, cols),
        in_specs=[pl.BlockSpec((tn, p), lambda i, j: (i, 0)),
                  pl.BlockSpec((p, tc), lambda i, j: (0, j)),
                  pl.BlockSpec((tn, 1), lambda i, j: (i, 0))],
        out_specs=pl.BlockSpec((tn, tc), lambda i, j: (i, j)),
        compiler_params=_compiler_params(("parallel", "parallel")),
    )(x2d, w, lse)
    if c_pad != c:
        out = out[:, :c]
    return out


def head_raw_logits(x2d, w, *, row_block=512, col_block=512,
                    out_dtype=jnp.bfloat16):
    n, p = x2d.shape
    w, c, c_pad = _pad_classes(w)
    tc = _pick_col_tile(c_pad, col_block)
    tn = min(row_block, n)
    out = pl.pallas_call(
        _head_raw_kernel,
        out_shape=jax.ShapeDtypeStruct((n, c_pad), out_dtype),
        grid=(pl.cdiv(n, tn), c_pad // tc),
        in_specs=[pl.BlockSpec((tn, p), lambda i, j: (i, 0)),
                  pl.BlockSpec((p, tc), lambda i, j: (0, j))],
        out_specs=pl.BlockSpec((tn, tc), lambda i, j: (i, j)),
        compiler_params=_compiler_params(("parallel", "parallel")),
    )(x2d, w)
    if c_pad != c:
        out = out[:, :c]
    return out


# ---------------------------------------------------------------------------
# Module forward (embedding gathers are XLA glue; hot path is the kernels).
# ---------------------------------------------------------------------------
def causal_rcn_forward(params, input_ids, type_ids=None, attention_mask=None,
                       *, window_size, n_layers, task="lm", use_aux_loss=False,
                       row_block=512, col_block=512, batch_block=None):
    bsz, seq = input_ids.shape
    emb = jnp.take(params["embeddings"], input_ids, axis=0)
    type_emb = (jnp.take(params["type_embedding"], type_ids, axis=0)
                if type_ids is not None else None)
    e = emb.shape[-1]
    emb2d = emb.reshape(bsz * seq, e)
    type2d = type_emb.reshape(bsz * seq, e) if type_emb is not None else None
    mask2d = (attention_mask.reshape(bsz * seq, 1).astype(jnp.bfloat16)
              if attention_mask is not None else None)
    # dropout is identity at inference.

    p = params["proj_w"].shape[1]
    x = embed_proj_silu_ln(emb2d, type2d, mask2d,
                           params["proj_w"], params["proj_b"],
                           params["ln_gamma"], params["ln_beta"],
                           row_block=row_block).reshape(bsz, seq, p)

    mixed = causal_conv_mixer(x, params["conv_w"], params["conv_b"],
                              window_size=window_size, n_layers=n_layers,
                              batch_block=batch_block, emit_aux=use_aux_loss)
    if use_aux_loss:
        x, aux = mixed
    else:
        x, aux = mixed, None

    c = params["head_w"].shape[1]
    logp = head_logsoftmax(x.reshape(bsz * seq, p), params["head_w"],
                           row_block=row_block, col_block=col_block)
    logp = logp.reshape(bsz, seq, c)

    aux_out = None
    if use_aux_loss:
        # Aux heads are raw llmhead logits (no log_softmax) in the reference.
        aux_logits = head_raw_logits(aux.reshape(n_layers * bsz * seq, p),
                                     params["head_w"],
                                     row_block=row_block, col_block=col_block)
        aux_logits = aux_logits.reshape(n_layers, bsz, seq, c)
        if task != "lm":
            aux_out = [aux_logits[l, :, -1, :] for l in range(n_layers)]
        else:
            aux_out = [aux_logits[l] for l in range(n_layers)]

    if task != "lm":
        logp = logp[:, -1, :]
    return logp, aux_out


# ---------------------------------------------------------------------------
# Deterministic parameter init + smoke test
# ---------------------------------------------------------------------------
def init_params(key, *, vocab_size, embedding_dim, projection_dim, categories,
                n_layers, window_size):
    ks = jax.random.split(key, 8)
    k, p = window_size, projection_dim
    emb = 0.02 * jax.random.normal(ks[0], (vocab_size, embedding_dim), jnp.float32)
    emb = emb.at[0].set(0.0)                                   # padding_idx = 0
    # conv taps: W_k maps x[t-k] -> out[t]; stored as one (P, K*P) block per
    # layer so the mixer does a single MXU matmul per layer.
    conv_w = 0.05 * jax.random.normal(ks[4], (n_layers, k, p, p), jnp.float32)
    conv_w = jnp.transpose(conv_w, (0, 2, 1, 3)).reshape(n_layers, p, k * p)
    return {
        "embeddings": emb.astype(jnp.bfloat16),
        "type_embedding": (0.02 * jax.random.normal(
            ks[1], (4, embedding_dim), jnp.float32)).astype(jnp.bfloat16),
        "proj_w": (0.05 * jax.random.normal(
            ks[2], (embedding_dim, p), jnp.float32)).astype(jnp.bfloat16),
        "proj_b": 0.05 * jax.random.normal(ks[3], (1, p), jnp.float32),
        "ln_gamma": jnp.ones((1, p), jnp.float32),
        "ln_beta": jnp.zeros((1, p), jnp.float32),
        "conv_w": conv_w.astype(jnp.bfloat16),
        "conv_b": 0.05 * jax.random.normal(ks[5], (n_layers, 1, p), jnp.float32),
        "head_w": (0.05 * jax.random.normal(
            ks[6], (p, categories), jnp.float32)).astype(jnp.bfloat16),
    }


if __name__ == "__main__":
    key = jax.random.PRNGKey(0)
    # Small but lane-dense shapes (P and C multiples of 128).
    B, S = 2, 16
    VOCAB, EMB, PROJ, CATS = 64, 64, 128, 256
    N_LAYERS, WINDOW = 2, 3

    pkey, ikey, tkey, hkey = jax.random.split(key, 4)
    params = init_params(pkey, vocab_size=VOCAB, embedding_dim=EMB,
                         projection_dim=PROJ, categories=CATS,
                         n_layers=N_LAYERS, window_size=WINDOW)

    input_ids = jax.random.randint(ikey, (B, S), 1, VOCAB)
    type_ids = jax.random.randint(tkey, (B, S), 0, 4)
    attention_mask = jnp.ones((B, S), jnp.float32)

    out, aux = causal_rcn_forward(params, input_ids, type_ids, attention_mask,
                                  window_size=WINDOW, n_layers=N_LAYERS,
                                  task="lm", use_aux_loss=False,
                                  row_block=16, col_block=128)
    jax.block_until_ready(out)
    assert out.shape == (B, S, CATS) and out.dtype == jnp.float32
    assert bool(jnp.all(jnp.isfinite(out)))
    # log_softmax rows must exponentiate-sum to ~1
    assert bool(jnp.allclose(jnp.sum(jnp.exp(out), axis=-1), 1.0, atol=1e-3))

    # Two-pass head kernel vs. a plain XLA log_softmax reference.
    xh = (0.5 * jax.random.normal(hkey, (B * S, PROJ), jnp.float32)
          ).astype(jnp.bfloat16)
    got = head_logsoftmax(xh, params["head_w"], row_block=16, col_block=128)
    want = jax.nn.log_softmax(
        jnp.dot(xh, params["head_w"], preferred_element_type=jnp.float32),
        axis=-1)
    assert bool(jnp.max(jnp.abs(got - want)) < 5e-3)

    print("KERNEL_OK")
</pallas_src>

<mosaic_0001>
module attributes {stable_mosaic.version = 11 : i64} {
  func.func @_embed_proj_kernel(%arg0: i32, %arg1: memref<16x64xbf16, #tpu.memory_space<vmem>>, %arg2: memref<16x64xbf16, #tpu.memory_space<vmem>>, %arg3: memref<16x1xbf16, #tpu.memory_space<vmem>>, %arg4: memref<64x128xbf16, #tpu.memory_space<vmem>>, %arg5: memref<1x128xf32, #tpu.memory_space<vmem>>, %arg6: memref<1x128xf32, #tpu.memory_space<vmem>>, %arg7: memref<1x128xf32, #tpu.memory_space<vmem>>, %arg8: memref<16x128xbf16, #tpu.memory_space<vmem>>) attributes {dimension_semantics = [#tpu.dimension_semantics<parallel>], iteration_bounds = array<i64: 2>, scalar_prefetch = 0 : i64, scratch_operands = 0 : i64, tpu.core_type = #tpu.core_type<tc>, window_params = [{transform_indices = @transform_0, window_bounds = array<i64: 16, 64>}, {transform_indices = @transform_1, window_bounds = array<i64: 16, 64>}, {transform_indices = @transform_2, window_bounds = array<i64: 16, 1>}, {pipeline_mode = #tpu.pipeline_mode<synchronous>, transform_indices = @transform_3, window_bounds = array<i64: 64, 128>}, {pipeline_mode = #tpu.pipeline_mode<synchronous>, transform_indices = @transform_4, window_bounds = array<i64: 1, 128>}, {pipeline_mode = #tpu.pipeline_mode<synchronous>, transform_indices = @transform_5, window_bounds = array<i64: 1, 128>}, {pipeline_mode = #tpu.pipeline_mode<synchronous>, transform_indices = @transform_6, window_bounds = array<i64: 1, 128>}, {transform_indices = @transform_7, window_bounds = array<i64: 16, 128>}]} {
    %c0 = arith.constant 0 : index
    %c0_0 = arith.constant 0 : index
    %0 = vector.load %arg1[%c0, %c0_0] : memref<16x64xbf16, #tpu.memory_space<vmem>>, vector<16x64xbf16>
    %c0_1 = arith.constant 0 : index
    %c0_2 = arith.constant 0 : index
    %1 = vector.load %arg2[%c0_1, %c0_2] : memref<16x64xbf16, #tpu.memory_space<vmem>>, vector<16x64xbf16>
    %2 = arith.addf %0, %1 : vector<16x64xbf16>
    %c0_3 = arith.constant 0 : index
    %c0_4 = arith.constant 0 : index
    %3 = vector.load %arg3[%c0_3, %c0_4] : memref<16x1xbf16, #tpu.memory_space<vmem>>, vector<16x1xbf16>
    %4 = vector.broadcast %3 : vector<16x1xbf16> to vector<16x64xbf16>
    %5 = arith.mulf %2, %4 : vector<16x64xbf16>
    %c0_5 = arith.constant 0 : index
    %c0_6 = arith.constant 0 : index
    %6 = vector.load %arg4[%c0_5, %c0_6] : memref<64x128xbf16, #tpu.memory_space<vmem>>, vector<64x128xbf16>
    %cst = arith.constant dense<0.000000e+00> : vector<16x128xf32>
    %7 = tpu.matmul %5, %6, %cst {dimension_numbers = #tpu.dot_dimension_numbers<[1], [0], [0], [1], [0, 0, 1, 1], [], []>} : vector<16x64xbf16>, vector<64x128xbf16>, vector<16x128xf32> -> vector<16x128xf32>
    %c0_7 = arith.constant 0 : index
    %c0_8 = arith.constant 0 : index
    %8 = vector.load %arg5[%c0_7, %c0_8] : memref<1x128xf32, #tpu.memory_space<vmem>>, vector<1x128xf32>
    %9 = vector.broadcast %8 : vector<1x128xf32> to vector<16x128xf32>
    %10 = arith.addf %7, %9 : vector<16x128xf32>
    %11 = arith.negf %10 : vector<16x128xf32>
    %12 = math.exp %11 : vector<16x128xf32>
    %cst_9 = arith.constant 1.000000e+00 : f32
    %13 = vector.broadcast %cst_9 : f32 to vector<16x128xf32>
    %14 = arith.addf %13, %12 : vector<16x128xf32>
    %15 = arith.divf %13, %14 : vector<16x128xf32>
    %16 = arith.mulf %10, %15 : vector<16x128xf32>
    %cst_10 = arith.constant dense<0.000000e+00> : vector<16xf32>
    %17 = vector.multi_reduction <add>, %16, %cst_10 [1] : vector<16x128xf32> to vector<16xf32>
    %18 = vector.shape_cast %17 : vector<16xf32> to vector<16x1xf32>
    %cst_11 = arith.constant 1.280000e+02 : f32
    %19 = vector.broadcast %cst_11 : f32 to vector<16x1xf32>
    %20 = arith.divf %18, %19 : vector<16x1xf32>
    %21 = vector.broadcast %20 : vector<16x1xf32> to vector<16x128xf32>
    %22 = arith.subf %16, %21 : vector<16x128xf32>
    %23 = arith.mulf %22, %22 : vector<16x128xf32>
    %cst_12 = arith.constant dense<0.000000e+00> : vector<16xf32>
    %24 = vector.multi_reduction <add>, %23, %cst_12 [1] : vector<16x128xf32> to vector<16xf32>
    %25 = vector.shape_cast %24 : vector<16xf32> to vector<16x1xf32>
    %cst_13 = arith.constant 1.280000e+02 : f32
    %26 = vector.broadcast %cst_13 : f32 to vector<16x1xf32>
    %27 = arith.divf %25, %26 : vector<16x1xf32>
    %28 = vector.broadcast %20 : vector<16x1xf32> to vector<16x128xf32>
    %29 = arith.subf %16, %28 : vector<16x128xf32>
    %cst_14 = arith.constant 9.99999974E-6 : f32
    %30 = vector.broadcast %cst_14 : f32 to vector<16x1xf32>
    %31 = arith.addf %27, %30 : vector<16x1xf32>
    %32 = math.rsqrt %31 : vector<16x1xf32>
    %33 = vector.broadcast %32 : vector<16x1xf32> to vector<16x128xf32>
    %34 = arith.mulf %29, %33 : vector<16x128xf32>
    %c0_15 = arith.constant 0 : index
    %c0_16 = arith.constant 0 : index
    %35 = vector.load %arg6[%c0_15, %c0_16] : memref<1x128xf32, #tpu.memory_space<vmem>>, vector<1x128xf32>
    %36 = vector.broadcast %35 : vector<1x128xf32> to vector<16x128xf32>
    %37 = arith.mulf %34, %36 : vector<16x128xf32>
    %c0_17 = arith.constant 0 : index
    %c0_18 = arith.constant 0 : index
    %38 = vector.load %arg7[%c0_17, %c0_18] : memref<1x128xf32, #tpu.memory_space<vmem>>, vector<1x128xf32>
    %39 = vector.broadcast %38 : vector<1x128xf32> to vector<16x128xf32>
    %40 = arith.addf %37, %39 : vector<16x128xf32>
    %41 = arith.truncf %40 : vector<16x128xf32> to vector<16x128xbf16>
    %c0_19 = arith.constant 0 : index
    %c0_20 = arith.constant 0 : index
    %42 = vector.load %arg8[%c0_19, %c0_20] : memref<16x128xbf16, #tpu.memory_space<vmem>>, vector<16x128xbf16>
    tpu.vector_store %arg8[%c0_19, %c0_20], %41 {strides = array<i32>} : memref<16x128xbf16, #tpu.memory_space<vmem>>, vector<16x128xbf16>,
    return
  }
  func.func @transform_0(%arg0: i32) -> (i32, i32) {
    %c0_i32 = arith.constant 0 : i32
    %c0_i32_0 = arith.constant 0 : i32
    return %arg0, %c0_i32 : i32, i32
  }
  func.func @transform_1(%arg0: i32) -> (i32, i32) {
    %c0_i32 = arith.constant 0 : i32
    %c0_i32_0 = arith.constant 0 : i32
    return %arg0, %c0_i32 : i32, i32
  }
  func.func @transform_2(%arg0: i32) -> (i32, i32) {
    %c0_i32 = arith.constant 0 : i32
    %c0_i32_0 = arith.constant 0 : i32
    return %arg0, %c0_i32 : i32, i32
  }
  func.func @transform_3(%arg0: i32) -> (i32, i32) {
    %c0_i32 = arith.constant 0 : i32
    %c0_i32_0 = arith.constant 0 : i32
    %c0_i32_1 = arith.constant 0 : i32
    return %c0_i32, %c0_i32_0 : i32, i32
  }
  func.func @transform_4(%arg0: i32) -> (i32, i32) {
    %c0_i32 = arith.constant 0 : i32
    %c0_i32_0 = arith.constant 0 : i32
    %c0_i32_1 = arith.constant 0 : i32
    return %c0_i32, %c0_i32_0 : i32, i32
  }
  func.func @transform_5(%arg0: i32) -> (i32, i32) {
    %c0_i32 = arith.constant 0 : i32
    %c0_i32_0 = arith.constant 0 : i32
    %c0_i32_1 = arith.constant 0 : i32
    return %c0_i32, %c0_i32_0 : i32, i32
  }
  func.func @transform_6(%arg0: i32) -> (i32, i32) {
    %c0_i32 = arith.constant 0 : i32
    %c0_i32_0 = arith.constant 0 : i32
    %c0_i32_1 = arith.constant 0 : i32
    return %c0_i32, %c0_i32_0 : i32, i32
  }
  func.func @transform_7(%arg0: i32) -> (i32, i32) {
    %c0_i32 = arith.constant 0 : i32
    %c0_i32_0 = arith.constant 0 : i32
    return %arg0, %c0_i32 : i32, i32
  }
}

</mosaic_0001>

<bundles_post_ra>
// kernel: tpu_custom_call.1
= control target key start
LH: loop header
LB: loop body
LE: loop exit
PB: predicated region body
PF: predicated region fallthrough
CT: control target
= control target key end

     0   :  { %s1166_s0 = inlined_call_operand.vmem [shape: bf16[32,64], index: 0, kind: input, shape index: {}]   ;;  %s1167_s1 = inlined_call_operand.hbm [shape: bf16[32,64], index: 1, kind: input, shape index: {}]   ;;  %s1168_s2 = inlined_call_operand.vmem [shape: bf16[32,1], index: 2, kind: input, shape index: {}]   ;;  %s1169_s3 = inlined_call_operand.hbm [shape: bf16[64,128], index: 3, kind: input, shape index: {}]   ;;  %s1170_s4 = inlined_call_operand.vmem [shape: f32[1,128], index: 4, kind: input, shape index: {}]   ;;  %s1171_s5 = inlined_call_operand.vmem [shape: f32[1,128], index: 5, kind: input, shape index: {}]   ;;  %s1172_s6 = inlined_call_operand.vmem [shape: f32[1,128], index: 6, kind: input, shape index: {}]   ;;  %s1173_s7 = inlined_call_operand.hbm [shape: bf16[32,128], index: 7, kind: output, shape index: {}]  }
   0x1   :  { %1176 = sst [smem:[#allocation11_spill]] %s1169_s3 }
   0x2   :  { %12 = vsyncpa [#allocation3], 0 }
   0x3   :  { %14 = vsyncpa [#allocation3 + $0x1], 0 }
   0x4   :  { %15 = vsyncpa [#allocation6], 0 }
   0x5   :  { %16 = vsyncpa [#allocation4], 0 }
   0x6   :  { %18 = vsyncpa [#allocation4 + $0x1], 0  ;;  %s1002_s24 = smov 0   ;;  %s1004_s25 = smov 0  }
   0x7   :  { %s1006_s26 = smov 0   ;;  %s1008_s27 = smov 0  }
   0x8 LB: > { %s1023_s28 = sadd.s32 4294967295, %s952_s27   ;;  %s682_s29 = sadd.s32 4294967294, %s952_s27   ;;  %s952_s27 = sphi %s1008_s27, %s1189_s27   ;;  %s948_s26 = sphi %s1006_s26, %s1188_s26   ;;  %s944_s25 = sphi %s1004_s25, %s1187_s25   ;;  %s940_s24 = sphi %s1002_s24, %s1186_s24  }
   0x9   : > { %p70_p0 = scmp.ne.s32.totalorder %s944_s25, %s940_s24  ;;  %p71_p1 = scmp.eq.s32.totalorder %s1023_s28, 0 }
   0xa   : > { %p204_p2 = scmp.eq.s32.totalorder %s1023_s28, 1  ;;  %p210_p3 = scmp.eq.s32.totalorder %s682_s29, 1 }
   0xb   : > { %p1032_p4 = por %p71_p1, %p70_p0  ;;  %p683_p5 = scmp.ge.s32.totalorder %s952_s27, 1 }
   0xc   : > { %p1037_p6 = por %p210_p3, %p70_p0  ;;  %p217_p7 = scmp.lt.s32.totalorder %s952_s27, 3 }
   0xd   : > { %s1179_s3 = sld [smem:[#allocation11_spill]]  ;;  %s954_s13 = smov [#allocation5]  }
   0xe   : > { %p1045_p8 = pnand %p683_p5, %p217_p7  ;;  %s230_s14 = sshll.u32 %s954_s13, 4  ;;  %s231_s14 = int_to_ptr.vmem [resolvable:$true] %s230_s14 }
   0xf   : > { %s1055_s15 = sadd.s32 1, %s952_s27   ;;  %s1174_s16 = smov 64  }
  0x10   : > { %p748_p9 = pneg %p1045_p8  ;;  %s1175_s17 = smov 4  }
  0x11   : > { %s54_s18 = ssub.s32 %s952_s27, %s1055_s15  ;;  %s57_s19 = sadd.s32 1, %s948_s26 }
  0x12   : > { %p749_p10 = pnand %p748_p9, %p71_p1  ;;  %p55_p12 = scmp.eq.s32.totalorder %s54_s18, 0 }
  0x13   : > { %s228_s11 = sshll.u32 %s1179_s3, 4  ;;  %p64_p13 = scmp.ne.s32.totalorder %s948_s26, %s944_s25  ;;  %s229_s11 = int_to_ptr.hbm [resolvable:$true] %s228_s11 }
  0x14   : > { %751 = dma.hbm_to_vmem [thread:$0]  (!%p749_p10), %s229_s11, 512, %s231_s14, [#allocation6], %s1174_s16, %s1174_s16, %s1175_s17  }
  0x15   : > { %p65_p0 = scmp.eq.s32.totalorder %s952_s27, 0  ;;  %p1071_p3 = por %p204_p2, %p64_p13 }
  0x16   : > { %s1067_s20 = scalar_select %p55_p12, %s948_s26, %s57_s19  }
  0x17   : > { %p761_p5 = scmp.lt.s32.totalorder %s952_s27, 2  ;;  %s262_s22 = sand.u32 1, %s948_s26  }
  0x18   : > { %s721_s23 = sshll.u32 %s952_s27, 3  ;;  %p66_p7 = por %p65_p0, %p64_p13 }
  0x19   : > { %s686_s29 = sshll.u32 %s262_s22, 3  ;;  %s271_s11 = scalar_lea.hbm %s1167_s1, %s721_s23 }
  0x1a   : > { %s272_s13 = sshll.u32 %s271_s11, 4  ;;  %s266_s14 = scalar_lea.vmem [#allocation2], %s686_s29  ;;  %s273_s13 = int_to_ptr.hbm [resolvable:$true] %s272_s13 }
  0x1b   : > { %s274_s18 = sshll.u32 %s266_s14, 4  ;;  %p1081_p9 = pnand %p761_p5, %p66_p7  ;;  %s275_s18 = int_to_ptr.vmem [resolvable:$true] %s274_s18 }
  0x1c   : > { %s263_s16 = scalar_lea.sflag [#allocation3], %s262_s22  ;;  %s852_s17 = sshra.s32 %s273_s13, 4  ;;  %s853_s17 = int_to_ptr.hbm [resolvable:$true] %s852_s17 }
  0x1d   : > { %s854_s3 = scalar_lea.hbm %s853_s17, 8  ;;  %p856_p10 = pneg %p1081_p9 }
  0x1e   : > { %p855_p2 = scmp.ne.s32.totalorder %s853_s17, %s854_s3  ;;  %s859_s29 = scalar_lea.hbm %s1167_s1, 16 }
  0x1f   : > { %p860_p0 = scmp.lt.s32.totalorder %s853_s17, %s1167_s1  ;;  %p861_p5 = scmp.lt.s32.totalorder %s859_s29, %s854_s3 }
  0x20   : > { %p857_p12 = pnand %p856_p10, %p855_p2 }
  0x21   : > { %p862_p7 = por %p861_p5, %p860_p0 }
  0x22   : > { %p858_p13 = pneg %p857_p12 }
  0x24   : > { %p863_p11 = pnand %p862_p7, %p858_p13 }
  0x26   : > { %866 = shalt.err (!%p863_p11)
}
  0x27   : > { %s1183_s22 = smov 4   ;;  %s1184_s14 = smov 64  }
  0x28   : > { %755 = dma.hbm_to_vmem [thread:$0]  (!%p1081_p9), %s273_s13, 128, %s275_s18, %s263_s16, %s1184_s14, %s1184_s14, %s1183_s22  }
  0x29   : > { %295 = sbr.rel (%p1045_p8) target bundleno = 625 (0x271), region = 48  ;;  %s1101_s23 = sand.u32 (!%p1045_p8), 1, %s944_s25  }
  0x2a   : > { %s690_s3 = sshll.u32 (!%p1045_p8), %s1101_s23, 3  ;;  %s298_s17 = scalar_lea.sflag (!%p1045_p8), [#allocation3], %s1101_s23 }
  0x2b   : > { %s301_s9 = scalar_lea.vmem (!%p1045_p8), [#allocation2], %s690_s3 }
  0x2e   : > { %927 = dma.done.wait (%p1032_p4), %s298_s17, 128  }
  0x2f   : > { %929 = vsyncadd (%p1032_p4), %s298_s17, 4294967168 }
  0x30   : > { %931 = dma.done.wait (%p71_p1), [#allocation6], 512  }
  0x31   : > { %933 = vsyncadd (%p71_p1), [#allocation6], 4294966784  ;;  %s693_s12 = sshll.u32 %s1023_s28, 1  ;;  %v957_v0 = vmov 0   ;;  %v725_v3 = vld [vmem:[#allocation5 + $0x18] sm:$0xff]  ;;  %v724_v4 = vld [vmem:[#allocation5 + $0x10] sm:$0xff] }
  0x32   : > { %804 = vset.pattern.permute.xlu0 %v957_v0  ;;  %p349_p8 = scmp.lt.s32.totalorder %s693_s12, 3  ;;  %446 = vmatpush.bf16.msra.mxu0 %v725_v3  ;;  %v723_v5 = vld [vmem:[#allocation5 + $0x8] sm:$0xff]  ;;  %v722_v6 = vld [vmem:[#allocation5] sm:$0xff]  ;;  %v732_v8 = vld [vmem:[%s301_s9] sm:$0xff]   ;;  %v958_v9 = vmov 839922192  }
  0x33   : > { %v383_v10 = vunpack.c.l.s4 %v958_v9  ;;  %v733_v13 = vunpack.c.l.bf16 %v732_v8  ;;  %v734_v14 = vunpack.c.h.bf16 %v732_v8  ;;  %vm438_vm0 = vcmask 523264   ;;  %v805_v31 = vld [vmem:[%s1170_s4] ss:$0 sm:$0xff]  ;;  %s726_s9 = sshll.u32 %s1023_s28, 3  ;;  %s347_s30 = scalar_lea.vmem [#allocation7], %s690_s3 }
  0x34   : > { %s1191_s12 = smov (!%p349_p8, %s693_s12), 3  ;;  %v959_v0 = vmov 128.0   ;;  %s571_s13 = scalar_lea.hbm %s1173_s7, %s726_s9 }
  0x35   : > { %s694_s16 = sshll.u32 %s1191_s12, 2  ;;  %v384_v16 = vunpack.c.0.s8 %v383_v10  ;;  %s572_s28 = sshll.u32 %s347_s30, 4  ;;  %s573_s28 = int_to_ptr.vmem [resolvable:$true] %s572_s28 }
  0x36   : > { %s359_s19 = scalar_lea.vmem %s1168_s2, %s694_s16  ;;  %447 = vmatpush.bf16.msra.mxu0 %v724_v4  ;;  %s352_s10 = scalar_lea.vmem %s1166_s0, %s694_s16 }
  0x37   : > { %v375_v1 = vld [vmem:[%s359_s19] sm:$0xf]  ;;  %v376_v2 = vld [vmem:[%s359_s19 + $0x4] sm:$0xf]  ;;  %s574_s29 = sshll.u32 %s571_s13, 4  ;;  %s902_s3 = scalar_lea.hbm %s1173_s7, 16  ;;  %s575_s29 = int_to_ptr.hbm [resolvable:$true] %s574_s29 }
  0x38   : > { %379 = vperm.xlu0 %804, %v375_v1   ;;  %v728_v7 = vld [vmem:[%s352_s10] sm:$0xff]   ;;  %s560_s10 = scalar_lea.sflag [#allocation4], %s1101_s23  ;;  %s896_s11 = sshra.s32 %s575_s29, 4  ;;  %s897_s11 = int_to_ptr.hbm [resolvable:$true] %s896_s11 }
  0x39   : > { %v729_v11 = vunpack.c.l.bf16 %v728_v7  ;;  %v730_v12 = vunpack.c.h.bf16 %v728_v7  ;;  %s898_s22 = scalar_lea.hbm %s897_s11, 8  ;;  %p903_p9 = scmp.lt.s32.totalorder %s897_s11, %s1173_s7 }
  0x3a   : > { %448 = vmatpush.bf16.msra.mxu0 %v723_v5  ;;  %p899_p1 = scmp.ne.s32.totalorder %s897_s11, %s898_s22  ;;  %p904_p2 = scmp.lt.s32.totalorder %s902_s3, %s898_s22 }
  0x3b   : > { %v371_v17 = vadd.f32 %v733_v13, %v729_v11  ;;  %v372_v18 = vadd.f32 %v734_v14, %v730_v12 }
  0x3c   : > { %p900_p4 = pnand %p899_p1, %p1071_p3  ;;  %p905_p10 = por %p904_p2, %p903_p9 }
  0x3d   : > { %v373_v19 = vpack.c.bf16 %v371_v17, %v371_v17  ;;  %v374_v21 = vpack.c.bf16 %v372_v18, %v372_v18 }
  0x3e   : > { %449 = vmatpush.bf16.msra.mxu0 %v722_v6  ;;  %p901_p11 = pneg %p900_p4 }
  0x3f   : > { %v395_v23 = vunpack.c.l.bf16 %v373_v19  ;;  %v396_v26 = vunpack.c.l.bf16 %v374_v21 }
  0x40   : > { %388 = vperm.xlu0 %804, %v376_v2   ;;  %p906_p12 = pnand %p905_p10, %p901_p11 }
  0xaa   : > { %v380_v15 = vpop.permute.xlu0 %379 }
  0xab   : > { %v385_v20 = vperm.slane %v380_v15, %v384_v16 }
  0xad   : > { %v397_v24 = vunpack.c.l.bf16 %v385_v20 }
  0xaf   : > { %v399_v28 = vmul.f32 %v397_v24, %v395_v23 }
  0xb2   : > { %v389_v22 = vpop.permute.xlu0 %388 }
  0xb3   : > { %v394_v25 = vperm.slane %v389_v22, %v384_v16 }
  0xb5   : > { %v398_v27 = vunpack.c.l.bf16 %v394_v25 }
  0xb7   : > { %v400_v29 = vmul.f32 %v398_v27, %v396_v26 }
  0xb9   : > { %v401_v30 = vpack.c.bf16 %v400_v29, %v399_v28 }
  0xbb   : > { %713 = vmatmul.msk.bf16.vlgmr.msra.gmra.mxu0 %vm438_vm0, %v401_v30 }
 0x138   : > { %v451_v32 = vpop.f32.mrf.mxu0 }
 0x139   : > { %v452_v33 = vadd.f32 %v805_v31, %v451_v32 }
 0x13b   : > { %v714_v34 = vmul.f32 -1.442695, %v452_v33 }
 0x13d   : > { %808 = vpow2.f32 %v714_v34 }
 0x140   : > { %v453_v35 = vpop.f32.mrf.mxu0 }
 0x141   : > { %v454_v36 = vadd.f32 %v805_v31, %v453_v35 }
 0x143   : > { %v809_v37 = vpop.eup %808  ;;  %v715_v38 = vmul.f32 -1.442695, %v454_v36 }
 0x144   : > { %v462_v39 = vadd.f32 1.0, %v809_v37  ;;  %v807_v37 = vld [vmem:[%s1172_s6] ss:$0 sm:$0xff] }
 0x145   : > { %810 = vpow2.f32 %v715_v38 }
 0x146   : > { %812 = vrcp.f32 %v462_v39  ;;  %v475_v45 = vand.u32 2147483648, %v462_v39  ;;  %v473_v47 = vand.u32 2147483647, %v462_v39  ;;  %vm469_vm2 = vweird.f32 %v462_v39 }
 0x148   : > { %v476_v50 = vor.u32 1.1754944e-38, %v475_v45  ;;  %vm474_vm4 = vcmp.eq.f32.partialorder %v473_v47, 8.507059e+37 }
 0x14b   : > { %v811_v40 = vpop.eup %810 }
 0x14c   : > { %v813_v41 = vpop.eup %812  ;;  %v463_v42 = vadd.f32 1.0, %v811_v40 }
 0x14d   : > { %v465_v43 = vmul.f32 %v813_v41, %v462_v39  ;;  %vm470_vm1 = vweird.f32 %v813_v41 }
 0x14e   : > { %814 = vrcp.f32 %v463_v42  ;;  %vm471_vm3 = vmor %vm469_vm2, %vm470_vm1  ;;  %v490_v56 = vand.u32 2147483648, %v463_v42  ;;  %v488_v58 = vand.u32 2147483647, %v463_v42  ;;  %vm484_vm6 = vweird.f32 %v463_v42 }
 0x14f   : > { %v466_v44 = vsub.f32 1.0, %v465_v43  ;;  %816 = vrcp.f32 %v959_v0 }
 0x150   : > { %v491_v60 = vor.u32 1.1754944e-38, %v490_v56  ;;  %vm489_vm8 = vcmp.eq.f32.partialorder %v488_v58, 8.507059e+37 }
 0x151   : > { %v467_v46 = vmul.f32 %v813_v41, %v466_v44 }
 0x153   : > { %v468_v48 = vadd.f32 %v813_v41, %v467_v46 }
 0x154   : > { %v815_v49 = vpop.eup %814 }
 0x155   : > { %v472_v51 = vsel %vm471_vm3, %v813_v41, %v468_v48  ;;  %v480_v52 = vmul.f32 %v815_v49, %v463_v42  ;;  %vm485_vm5 = vweird.f32 %v815_v49  ;;  %v817_v1 = vpop.eup %816 }
 0x156   : > { %v477_v53 = vsel %vm474_vm4, %v476_v50, %v472_v51  ;;  %vm486_vm7 = vmor %vm484_vm6, %vm485_vm5  ;;  %v501_v2 = vmul.f32 128.0, %v817_v1  ;;  %vm505_vm9 = vweird.f32 %v817_v1 }
 0x157   : > { %v494_v54 = vmul.f32 %v477_v53, %v452_v33  ;;  %v481_v55 = vsub.f32 1.0, %v480_v52  ;;  %v806_v33 = vld [vmem:[%s1171_s5] ss:$0 sm:$0xff] }
 0x158   : > { %v502_v3 = vsub.f32 1.0, %v501_v2 }
 0x159   : > { %496 = vadd.xlane.f32.xlu1 %v494_v54  ;;  %v482_v57 = vmul.f32 %v815_v49, %v481_v55 }
 0x15a   : > { %v503_v4 = vmul.f32 %v817_v1, %v502_v3 }
 0x15b   : > { %v483_v59 = vadd.f32 %v815_v49, %v482_v57 }
 0x15c   : > { %v504_v5 = vadd.f32 %v817_v1, %v503_v4 }
 0x15d   : > { %v487_v61 = vsel %vm486_vm7, %v815_v49, %v483_v59 }
 0x15e   : > { %v492_v62 = vsel %vm489_vm8, %v491_v60, %v487_v61  ;;  %v506_v6 = vsel %vm505_vm9, %v817_v1, %v504_v5 }
 0x15f   : > { %v495_v63 = vmul.f32 %v492_v62, %v454_v36 }
 0x161   : > { %498 = vadd.xlane.f32.xlu1 %v495_v63 }
 0x1cc   : > { %v497_v7 = vpop.xlane.xlu1 %496 }
 0x1cd   : > { %v507_v8 = vmul.f32 %v506_v6, %v497_v7 }
 0x1cf   : > { %v509_v9 = vsub.f32 %v494_v54, %v507_v8 }
 0x1d1   : > { %v511_v10 = vmul.f32 %v509_v9, %v509_v9 }
 0x1d3   : > { %513 = vadd.xlane.f32.xlu2 %v511_v10 }
 0x1d4   : > { %v499_v11 = vpop.xlane.xlu1 %498 }
 0x1d5   : > { %v508_v12 = vmul.f32 %v506_v6, %v499_v11 }
 0x1d7   : > { %v510_v13 = vsub.f32 %v495_v63, %v508_v12 }
 0x1d9   : > { %v512_v14 = vmul.f32 %v510_v13, %v510_v13 }
 0x1db   : > { %515 = vadd.xlane.f32.xlu2 %v512_v14 }
 0x246   : > { %v514_v15 = vpop.xlane.xlu2 %513 }
 0x247   : > { %v517_v16 = vmul.f32 %v514_v15, %v506_v6 }
 0x249   : > { %v519_v17 = vadd.f32 1e-05, %v517_v16 }
 0x24b   : > { %818 = vrsqrt.f32 %v519_v17  ;;  %vm527_vm11 = vweird.f32 %v519_v17 }
 0x24e   : > { %v516_v18 = vpop.xlane.xlu2 %515 }
 0x24f   : > { %v518_v19 = vmul.f32 %v516_v18, %v506_v6 }
 0x251   : > { %v819_v20 = vpop.eup %818  ;;  %v520_v21 = vadd.f32 1e-05, %v518_v19 }
 0x252   : > { %v522_v22 = vmul.f32 %v819_v20, %v519_v17  ;;  %vm528_vm10 = vweird.f32 %v819_v20 }
 0x253   : > { %820 = vrsqrt.f32 %v520_v21  ;;  %vm529_vm12 = vmor %vm527_vm11, %vm528_vm10  ;;  %vm537_vm14 = vweird.f32 %v520_v21 }
 0x254   : > { %v523_v23 = vmul.f32 %v819_v20, %v522_v22 }
 0x256   : > { %v524_v24 = vmul.f32 0.5, %v523_v23 }
 0x258   : > { %v525_v25 = vsub.f32 1.5, %v524_v24 }
 0x259   : > { %v821_v26 = vpop.eup %820 }
 0x25a   : > { %v526_v27 = vmul.f32 %v819_v20, %v525_v25  ;;  %v532_v28 = vmul.f32 %v821_v26, %v520_v21  ;;  %vm538_vm13 = vweird.f32 %v821_v26 }
 0x25b   : > { %vm539_vm15 = vmor %vm537_vm14, %vm538_vm13 }
 0x25c   : > { %v533_v29 = vmul.f32 %v821_v26, %v532_v28  ;;  %v530_v30 = vsel %vm529_vm12, %v819_v20, %v526_v27 }
 0x25d   : > { %v541_v34 = vmul.f32 %v530_v30, %v509_v9 }
 0x25e   : > { %v534_v31 = vmul.f32 0.5, %v533_v29 }
 0x25f   : > { %v547_v38 = vmul.f32 %v806_v33, %v541_v34 }
 0x260   : > { %v535_v32 = vsub.f32 1.5, %v534_v31 }
 0x261   : > { %v553_v41 = vadd.f32 %v807_v37, %v547_v38 }
 0x262   : > { %v536_v35 = vmul.f32 %v821_v26, %v535_v32 }
 0x264   : > { %v540_v36 = vsel %vm539_vm15, %v821_v26, %v536_v35 }
 0x265   : > { %v542_v39 = vmul.f32 %v540_v36, %v510_v13 }
 0x267   : > { %v548_v40 = vmul.f32 %v806_v33, %v542_v39 }
 0x269   : > { %v554_v42 = vadd.f32 %v807_v37, %v548_v40 }
 0x26b   : > { %v738_v43 = vpack.c.bf16 %v554_v42, %v553_v41 }
 0x26d   : > { %739 = vst [vmem:[%s347_s30] sm:$0xff] %v738_v43  }
 0x26e   : > { %909 = shalt.err (!%p906_p12)
}
 0x26f   : > { %s960_s23 = smov 64   ;;  %s961_s16 = smov 4  }
 0x270   : > { %746 = dma.vmem_to_hbm [thread:$0]  (%p1071_p3), %s573_s28, 128, %s575_s29, %s560_s10, %s960_s23, %s960_s23, %s961_s16  }
 0x271 PF: > { %s589_s13 = sand.u32 1, %s940_s24   ;;  %p1185_p13 = scmp.ge.s32.totalorder %s952_s27, 2 }
 0x272   : > { %s590_s18 = scalar_lea.sflag [#allocation4], %s589_s13 }
 0x273   : > { %p757_p0 = pnand %p1185_p13, %p1037_p6 }
 0x275   : > { %p758_p5 = pneg %p757_p0 }
 0x277   : > { %935 = dma.done.wait (%p758_p5), %s590_s18, 128  }
 0x278   : > { %937 = vsyncadd (%p758_p5), %s590_s18, 4294967168  ;;  %p21_p7 = scmp.ge.s32.totalorder %s1055_s15, 4   ;;  %s1186_s24 = smov %s944_s25 }
 0x279   : > { %s1187_s25 = smov %s948_s26  ;;  %s1188_s26 = smov %s1067_s20 }
 0x27a   : > { %s1189_s27 = smov %s1055_s15  ;;  %23 = sbr.rel (!%p21_p7) target bundleno = 8 (0x8), region = 103 }
 0x27f   :  { %596 = vsyncpa [#allocation3], 1 }
 0x280   :  { %598 = vsyncpa [#allocation3 + $0x1], 1 }
 0x281   :  { %599 = vsyncpa [#allocation6], 1 }
 0x282   :  { %600 = vsyncpa [#allocation4], 1 }
 0x283   :  { %602 = vsyncpa [#allocation4 + $0x1], 1 }

</bundles_post_ra>
